<compile_context>
chip_gen: v7x
topology: tpu7x:2x2x1
jax: 0.10.0
libtpu: 0.0.40
codegen_flags: <defaults>
</compile_context>

<pallas_src>
import jax
import jax.numpy as jnp
from jax.experimental import pallas as pl
from jax.experimental.pallas import tpu as pltpu

LANES = 128
SUBLANES = 8
NUM_CORES = 2                 # leading "parallel" grid axis (v7x has 2 TCs)
DEFAULT_ROW_BLOCK = 1024      # 1024 x 128 f32 = 512 KiB per input tile


def _make_rmse_kernel(rows, row_block, steps_per_core):
    folds = row_block // SUBLANES

    def kernel(o_ref, t_ref, out_ref, acc_ref):
        i = pl.program_id(1)

        @pl.when(i == 0)
        def _():
            acc_ref[...] = jnp.zeros_like(acc_ref)

        # Nominal block index for this (core, step). It may point one past the
        # last valid block when nblocks is odd; those rows are fully masked.
        b = pl.program_id(0) * steps_per_core + i
        row_idx = b * row_block + jax.lax.broadcasted_iota(
            jnp.int32, (row_block, LANES), 0)
        valid = row_idx < rows

        o = o_ref[...].astype(jnp.float32)
        t = t_ref[...].astype(jnp.float32)
        # Mask BEFORE the divide so padded/garbage rows contribute exactly 0
        # (avoids 0 * inf = NaN from arbitrary padded target values).
        o = jnp.where(valid, o, 1.0)
        t = jnp.where(valid, t, 1.0)
        d = (o - t) / t
        dd = d * d

        # Row-only reduction (pure VPU adds of (8,128) vregs) into the scratch
        # accumulator; no per-step cross-lane reduction.
        acc_ref[...] += dd.reshape(folds, SUBLANES, LANES).sum(axis=0)

        @pl.when(i == pl.num_programs(1) - 1)
        def _():
            out_ref[...] = jnp.sum(acc_ref[...]).reshape(1, 1, 1)

    return kernel


def rmse_loss(output, target, *, row_block=DEFAULT_ROW_BLOCK):
    """mean(((output - target) / target) ** 2), matching the PyTorch module."""
    assert output.shape == target.shape
    n = output.size

    o = output.reshape(-1)
    t = target.reshape(-1)

    rows = n // LANES
    # Kernel path needs at least one (8, 128) tile; tiny inputs fall back to
    # plain jnp (they are latency-bound anyway).
    rows_k = rows if rows >= SUBLANES else 0
    main = rows_k * LANES

    total = jnp.zeros((), jnp.float32)

    if rows_k:
        # Pure reshape when n is a multiple of 128 (no HBM copy); otherwise a
        # prefix slice, with the <128-element tail handled below in plain jnp.
        o2 = (o if main == n else o[:main]).reshape(rows_k, LANES)
        t2 = (t if main == n else t[:main]).reshape(rows_k, LANES)

        rb = min(row_block, (rows_k // SUBLANES) * SUBLANES)
        nblocks = pl.cdiv(rows_k, rb)
        steps_per_core = pl.cdiv(nblocks, NUM_CORES)

        def in_index_map(c, i):
            b = c * steps_per_core + i
            # Clamp so the DMA never targets a fully out-of-bounds block; the
            # kernel masks those rows so they contribute 0.
            return (jnp.minimum(b, nblocks - 1), 0)

        partials = pl.pallas_call(
            _make_rmse_kernel(rows_k, rb, steps_per_core),
            out_shape=jax.ShapeDtypeStruct((NUM_CORES, 1, 1), jnp.float32),
            grid_spec=pltpu.PrefetchScalarGridSpec(
                num_scalar_prefetch=0,
                grid=(NUM_CORES, steps_per_core),
                in_specs=[
                    pl.BlockSpec((rb, LANES), in_index_map),
                    pl.BlockSpec((rb, LANES), in_index_map),
                ],
                out_specs=pl.BlockSpec((1, 1, 1), lambda c, i: (c, 0, 0)),
                scratch_shapes=[pltpu.VMEM((SUBLANES, LANES), jnp.float32)],
            ),
            compiler_params=pltpu.CompilerParams(
                dimension_semantics=("parallel", "arbitrary"),
            ),
        )(o2, t2)
        total = total + jnp.sum(partials)

    if main < n:
        ot = o[main:].astype(jnp.float32)
        tt = t[main:].astype(jnp.float32)
        dt = (ot - tt) / tt
        total = total + jnp.sum(dt * dt)

    # NOTE: target elements equal to 0 yield inf, same as the PyTorch module.
    return total / jnp.float32(n)


if __name__ == "__main__":
    key = jax.random.PRNGKey(0)
    k1, k2 = jax.random.split(key)
    # Small NCHW-style shapes, consistent with a typical regression output/target.
    shape = (2, 4, 16, 16)
    output = jax.random.normal(k1, shape, dtype=jnp.float32)
    # Keep target away from zero to avoid division blow-up (matches typical usage).
    target = jax.random.normal(k2, shape, dtype=jnp.float32) + 3.0

    loss = jax.jit(rmse_loss)(output, target)
    jax.block_until_ready(loss)

    # Pure-JAX reference check.
    ref = jnp.mean(((output - target) / target) ** 2)
    assert jnp.allclose(loss, ref, rtol=1e-5, atol=1e-6), (loss, ref)

    print("KERNEL_OK")
</pallas_src>

<mosaic_0001>
module attributes {stable_mosaic.version = 11 : i64} {
  func.func @kernel(%arg0: i32, %arg1: i32, %arg2: memref<16x128xf32, #tpu.memory_space<vmem>>, %arg3: memref<16x128xf32, #tpu.memory_space<vmem>>, %arg4: memref<1x1x1xf32, #tpu.memory_space<vmem>>, %arg5: memref<8x128xf32, #tpu.memory_space<vmem>>) attributes {dimension_semantics = [#tpu.dimension_semantics<parallel>, #tpu.dimension_semantics<arbitrary>], iteration_bounds = array<i64: 2, 1>, scalar_prefetch = 0 : i64, scratch_operands = 1 : i64, tpu.core_type = #tpu.core_type<tc>, window_params = [{transform_indices = @transform_0, window_bounds = array<i64: 16, 128>}, {transform_indices = @transform_1, window_bounds = array<i64: 16, 128>}, {transform_indices = @transform_2, window_bounds = array<i64: 1, 1, 1>}]} {
    %c0_i32 = arith.constant 0 : i32
    %0 = arith.cmpi eq, %arg1, %c0_i32 : i32
    %1 = arith.extui %0 : i1 to i32
    %c0_i32_0 = arith.constant 0 : i32
    %2 = arith.cmpi ne, %1, %c0_i32_0 : i32
    scf.if %2 {
      %cst_13 = arith.constant 0.000000e+00 : f32
      %28 = vector.broadcast %cst_13 : f32 to vector<8x128xf32>
      %c0_14 = arith.constant 0 : index
      %c0_15 = arith.constant 0 : index
      %29 = vector.load %arg5[%c0_14, %c0_15] : memref<8x128xf32, #tpu.memory_space<vmem>>, vector<8x128xf32>
      tpu.vector_store %arg5[%c0_14, %c0_15], %28 {strides = array<i32>} : memref<8x128xf32, #tpu.memory_space<vmem>>, vector<8x128xf32>,
    } else {
    }
    %c1_i32 = arith.constant 1 : i32
    %3 = arith.muli %arg0, %c1_i32 : i32
    %4 = arith.addi %3, %arg1 : i32
    %c16_i32 = arith.constant 16 : i32
    %5 = arith.muli %4, %c16_i32 : i32
    %6 = tpu.iota {dimensions = array<i32: 0>} : vector<16x128xi32>
    %7 = vector.broadcast %5 : i32 to vector<16x128xi32>
    %8 = arith.addi %7, %6 : vector<16x128xi32>
    %c16_i32_1 = arith.constant 16 : i32
    %9 = vector.broadcast %c16_i32_1 : i32 to vector<16x128xi32>
    %10 = arith.cmpi slt, %8, %9 : vector<16x128xi32>
    %c0 = arith.constant 0 : index
    %c0_2 = arith.constant 0 : index
    %11 = vector.load %arg2[%c0, %c0_2] : memref<16x128xf32, #tpu.memory_space<vmem>>, vector<16x128xf32>
    %c0_3 = arith.constant 0 : index
    %c0_4 = arith.constant 0 : index
    %12 = vector.load %arg3[%c0_3, %c0_4] : memref<16x128xf32, #tpu.memory_space<vmem>>, vector<16x128xf32>
    %cst = arith.constant 1.000000e+00 : f32
    %13 = vector.broadcast %cst : f32 to vector<16x128xf32>
    %14 = arith.select %10, %11, %13 : vector<16x128xi1>, vector<16x128xf32>
    %cst_5 = arith.constant 1.000000e+00 : f32
    %15 = vector.broadcast %cst_5 : f32 to vector<16x128xf32>
    %16 = arith.select %10, %12, %15 : vector<16x128xi1>, vector<16x128xf32>
    %17 = arith.subf %14, %16 : vector<16x128xf32>
    %18 = arith.divf %17, %16 : vector<16x128xf32>
    %19 = arith.mulf %18, %18 : vector<16x128xf32>
    %c0_6 = arith.constant 0 : index
    %c0_7 = arith.constant 0 : index
    %20 = vector.load %arg5[%c0_6, %c0_7] : memref<8x128xf32, #tpu.memory_space<vmem>>, vector<8x128xf32>
    %21 = vector.shape_cast %19 : vector<16x128xf32> to vector<2x8x128xf32>
    %cst_8 = arith.constant dense<0.000000e+00> : vector<8x128xf32>
    %22 = vector.multi_reduction <add>, %21, %cst_8 [0] : vector<2x8x128xf32> to vector<8x128xf32>
    %23 = arith.addf %20, %22 : vector<8x128xf32>
    %c0_9 = arith.constant 0 : index
    %c0_10 = arith.constant 0 : index
    %24 = vector.load %arg5[%c0_9, %c0_10] : memref<8x128xf32, #tpu.memory_space<vmem>>, vector<8x128xf32>
    tpu.vector_store %arg5[%c0_9, %c0_10], %23 {strides = array<i32>} : memref<8x128xf32, #tpu.memory_space<vmem>>, vector<8x128xf32>,
    %c0_i32_11 = arith.constant 0 : i32
    %25 = arith.cmpi eq, %arg1, %c0_i32_11 : i32
    %26 = arith.extui %25 : i1 to i32
    %c0_i32_12 = arith.constant 0 : i32
    %27 = arith.cmpi ne, %26, %c0_i32_12 : i32
    scf.if %27 {
      %c0_13 = arith.constant 0 : index
      %c0_14 = arith.constant 0 : index
      %28 = vector.load %arg5[%c0_13, %c0_14] : memref<8x128xf32, #tpu.memory_space<vmem>>, vector<8x128xf32>
      %29 = vector.shape_cast %28 : vector<8x128xf32> to vector<1x8x128xf32>
      %cst_15 = arith.constant dense<0.000000e+00> : vector<1xf32>
      %30 = vector.multi_reduction <add>, %29, %cst_15 [1, 2] : vector<1x8x128xf32> to vector<1xf32>
      %31 = vector.shape_cast %30 : vector<1xf32> to vector<1x1x1xf32>
      %32 = vector.extract %31[0, 0, 0] : f32 from vector<1x1x1xf32>
      %33 = vector.broadcast %32 : f32 to vector<1x1x1xf32>
      %c0_16 = arith.constant 0 : index
      %c0_17 = arith.constant 0 : index
      %c0_18 = arith.constant 0 : index
      %34 = vector.load %arg4[%c0_16, %c0_17, %c0_18] : memref<1x1x1xf32, #tpu.memory_space<vmem>>, vector<1x1x1xf32>
      tpu.vector_store %arg4[%c0_16, %c0_17, %c0_18], %33 {strides = array<i32>} : memref<1x1x1xf32, #tpu.memory_space<vmem>>, vector<1x1x1xf32>,
    } else {
    }
    return
  }
  func.func @transform_0(%arg0: i32, %arg1: i32) -> (i32, i32) {
    %c1_i32 = arith.constant 1 : i32
    %0 = arith.muli %arg0, %c1_i32 : i32
    %1 = arith.addi %0, %arg1 : i32
    %c0_i32 = arith.constant 0 : i32
    %2 = arith.minsi %1, %c0_i32 : i32
    %c0_i32_0 = arith.constant 0 : i32
    %c0_i32_1 = arith.constant 0 : i32
    return %2, %c0_i32_0 : i32, i32
  }
  func.func @transform_1(%arg0: i32, %arg1: i32) -> (i32, i32) {
    %c1_i32 = arith.constant 1 : i32
    %0 = arith.muli %arg0, %c1_i32 : i32
    %1 = arith.addi %0, %arg1 : i32
    %c0_i32 = arith.constant 0 : i32
    %2 = arith.minsi %1, %c0_i32 : i32
    %c0_i32_0 = arith.constant 0 : i32
    %c0_i32_1 = arith.constant 0 : i32
    return %2, %c0_i32_0 : i32, i32
  }
  func.func @transform_2(%arg0: i32, %arg1: i32) -> (i32, i32, i32) {
    %c0_i32 = arith.constant 0 : i32
    %c0_i32_0 = arith.constant 0 : i32
    %c0_i32_1 = arith.constant 0 : i32
    return %arg0, %c0_i32, %c0_i32_0 : i32, i32, i32
  }
}

</mosaic_0001>

<bundles_post_ra>
// kernel: rmse_loss.1
= control target key start
LH: loop header
LB: loop body
LE: loop exit
PB: predicated region body
PF: predicated region fallthrough
CT: control target
= control target key end

     0   :  { %s417_s9 = smov 0   ;;  %s419_s10 = smov 0   ;;  %s460_s0 = inlined_call_operand.vmem [shape: f32[16,128], index: 0, kind: input, shape index: {}]   ;;  %s461_s1 = inlined_call_operand.vmem [shape: f32[16,128], index: 1, kind: input, shape index: {}]   ;;  %s462_s2 = inlined_call_operand.vmem [shape: f32[2,1,1], index: 2, kind: output, shape index: {}]  }
   0x1   :  { %s421_s11 = smov 0  }
   0x2 LB: > { %s24_s12 = sadd.s32 1, %s396_s10  ;;  %p340_p0 = scmp.ge.s32.totalorder %s400_s11, 1  ;;  %s400_s11 = sphi %s421_s11, %s12_s11   ;;  %s396_s10 = sphi %s419_s10, %s464_s10   ;;  %s392_s9 = sphi %s417_s9, %s463_s9  }
   0x3   : > { %p26_p1 = scmp.ge.s32.totalorder %s24_s12, 2  ;;  %p160_p2 = scmp.lt.s32.totalorder %s400_s11, 3 }
   0x5   : > { %s466_s12 = smov (%p26_p1, %s24_s12), 0  ;;  %p161_p3 = pnand %p340_p0, %p160_p2 }
   0x6   : > { %p192_p4 = scmp.lt.s32.totalorder (!%p161_p3), %s392_s9, 0  ;;  %s345_s13 = sshll.u32 (!%p161_p3), %s392_s9, 4  ;;  %v225_v0 = vlaneseq (!%p161_p3)  ;;  %vm267_vm2 = vcmask (!%p161_p3), 0  }
   0x7   : > { %164 = sbr.rel (%p161_p3) target bundleno = 248 (0xf8), region = 28  ;;  %v228_v2 = vstv (!%p161_p3), %s345_s13  ;;  %p215_p6 = scmp.lt.s32.totalorder (!%p161_p3), %s392_s9, 1 }
   0x8   : > { %v226_v1 = vshrl.u32 (!%p161_p3), %v225_v0, 7 }
   0xa   : > { %v227_v3 = vadd.s32 (!%p161_p3), 8, %v226_v1  ;;  %v229_v4 = vadd.s32 (!%p161_p3), %v228_v2, %v226_v1 }
   0xc   : > { %v230_v5 = vadd.s32 (!%p161_p3), %v228_v2, %v227_v3  ;;  %vm231_vm0 = vcmp.lt.s32.totalorder (!%p161_p3), %v229_v4, 16 }
   0xe   : > { %s193_s14 = scalar_select %p192_p4, %s392_s9, 0  ;;  %vm232_vm1 = vcmp.lt.s32.totalorder %v230_v5, 16 }
   0xf   : > { %s470_s9 = smov (!%p215_p6, %s392_s9), 1 }
  0x10   : > { %s341_s15 = sshll.u32 %s193_s14, 1  ;;  %s217_s25 = scalar_lea.vmem %s462_s2, %s470_s9 }
  0x11   : > { %p195_p5 = scmp.lt.s32.totalorder %s341_s15, 1 }
  0x13   : > { %s468_s15 = smov (!%p195_p5, %s341_s15), 1 }
  0x14   : > { %s342_s16 = sshll.u32 %s468_s15, 3 }
  0x15   : > { %s210_s19 = scalar_lea.vmem %s461_s1, %s342_s16  ;;  %s198_s22 = scalar_lea.vmem %s460_s0, %s342_s16 }
  0x16   : > { %v235_v6 = vld [vmem:[%s210_s19] sm:$0xff]  ;;  %v236_v7 = vld [vmem:[%s210_s19 + $0x8] sm:$0xff] }
  0x17   : > { %v239_v8 = vsel %vm231_vm0, %v235_v6, 1.0  ;;  %v240_v9 = vsel %vm232_vm1, %v236_v7, 1.0  ;;  %v233_v10 = vld [vmem:[%s198_s22] sm:$0xff]  ;;  %v234_v11 = vld [vmem:[%s198_s22 + $0x8] sm:$0xff] }
  0x18   : > { %374 = vrcp.f32 %v239_v8  ;;  %v237_v12 = vsel %vm231_vm0, %v233_v10, 1.0  ;;  %v238_v13 = vsel %vm232_vm1, %v234_v11, 1.0 }
  0x19   : > { %376 = vrcp.f32 %v240_v9  ;;  %v241_v14 = vsub.f32 %v237_v12, %v239_v8  ;;  %v242_v15 = vsub.f32 %v238_v13, %v240_v9 }
  0x22   : > { %v375_v16 = vpop.eup %374 }
  0x23   : > { %v377_v17 = vpop.eup %376  ;;  %v244_v18 = vmul.f32 %v375_v16, %v241_v14 }
  0x24   : > { %v246_v19 = vmul.f32 %v377_v17, %v242_v15 }
  0x25   : > { %v247_v20 = vmul.f32 %v244_v18, %v244_v18 }
  0x26   : > { %v248_v21 = vmul.f32 %v246_v19, %v246_v19 }
  0x28   : > { %v250_v22 = vadd.f32 %v248_v21, %v247_v20 }
  0x2a   : > { %257 = vadd.xlane.f32.xlu0 %v250_v22 }
  0xb7   : > { %v258_v23 = vpop.xlane.xlu0 %257 }
  0xb8   : > { %v259_v24 = vrot.slane %v258_v23, 4 }
  0xba   : > { %v260_v25 = vadd.f32 %v259_v24, %v258_v23 }
  0xbc   : > { %v261_v26 = vrot.slane %v260_v25, 2 }
  0xbe   : > { %v262_v27 = vadd.f32 %v261_v26, %v260_v25 }
  0xc0   : > { %v263_v28 = vrot.slane %v262_v27, 1 }
  0xc2   : > { %v264_v29 = vadd.f32 %v263_v28, %v262_v27 }
  0xc4   : > { %348 = vpush %v264_v29 }
  0xf5   : > { %s349_s26 = spop %348 }
  0xf6   : > { %v266_v30 = vstv %s349_s26 }
  0xf7   : > { %268 = vst.msk [vmem:[%s217_s25] sm:$0x1] %vm267_vm2, %v266_v30 }
  0xf8 PF: > { %s12_s11 = sadd.s32 1, %s400_s11   ;;  %s463_s9 = smov %s396_s10 }
  0xf9   : > { %p9_p7 = scmp.ge.s32.totalorder %s12_s11, 4   ;;  %s464_s10 = smov %s466_s12 }
  0xfb   :  { %11 = sbr.rel (!%p9_p7) target bundleno = 2 (0x2), region = 69 }

</bundles_post_ra>
